<compile_context>
chip_gen: v5e
topology: v5e:2x2
jax: 0.10.0
libtpu: 0.0.40
codegen_flags: <defaults>
</compile_context>

<pallas_src>
import jax
import jax.numpy as jnp
from jax.experimental import pallas as pl
from jax.experimental.pallas import tpu as pltpu


def _affinity_vae_kernel(
    # batch-tiled inputs
    x_ref, eps_ref,
    # resident weights / biases
    we1_ref, be1_ref,
    wh_ref, bh_ref, slv_ref,
    wd1_ref, bd1_ref,
    wd2_ref, bd2_ref,
    # batch-tiled outputs
    xrec_ref, slab_ref,
):
    f32 = jnp.float32
    bf16 = jnp.bfloat16

    # ---------------- encoder hidden layer (bf16 MXU, f32 accumulate) --------
    h = jnp.dot(x_ref[...], we1_ref[...], preferred_element_type=f32) + be1_ref[...]
    h = jnp.maximum(h, 0.0).astype(bf16)

    # ---------------- fused heads: one 128-wide matmul ------------------------
    # head columns: [mu(L) | log_var(L) | mu dup -> z slot (L) | pose(P) | 0 pad]
    head = jnp.dot(h, wh_ref[...], preferred_element_type=f32) + bh_ref[...]

    # ---------------- reparameterize (lane-dense, f32) ------------------------
    # slv is a one-hot f32 selector copying the log_var columns onto the z
    # columns (exact copy); elsewhere lv_at_z == 0 so exp() == 1 and eps == 0.
    lv_at_z = jnp.dot(head, slv_ref[...], preferred_element_type=f32)
    packed = head + eps_ref[...] * jnp.exp(0.5 * lv_at_z)
    slab_ref[...] = packed          # [mu | log_var | z | pose | pad]

    # ---------------- decoder --------------------------------------------------
    # wd1 rows are zero except the z rows (Wdz) and pose rows (Wdp), so this is
    # exactly [z ; pose] @ Wd1 fused into one matmul.
    hd = jnp.dot(packed.astype(bf16), wd1_ref[...], preferred_element_type=f32) + bd1_ref[...]
    hd = jnp.maximum(hd, 0.0).astype(bf16)
    xrec_ref[...] = (
        jnp.dot(hd, wd2_ref[...], preferred_element_type=f32) + bd2_ref[...]
    ).astype(xrec_ref.dtype)


def init_params(d_in, hidden, latent, pose_dims, seed=1):
    """Deterministic synthetic parameters (f32 master copies)."""
    keys = jax.random.split(jax.random.PRNGKey(seed), 8)
    s = 0.05
    return {
        "we1": jax.random.normal(keys[0], (d_in, hidden), jnp.float32) * s,
        "be1": jnp.zeros((1, hidden), jnp.float32),
        "wmu": jax.random.normal(keys[1], (hidden, latent), jnp.float32) * s,
        "bmu": jnp.zeros((1, latent), jnp.float32),
        "wlv": jax.random.normal(keys[2], (hidden, latent), jnp.float32) * s,
        "blv": jnp.zeros((1, latent), jnp.float32),
        "wpo": jax.random.normal(keys[3], (hidden, pose_dims), jnp.float32) * s,
        "bpo": jnp.zeros((1, pose_dims), jnp.float32),
        "wdz": jax.random.normal(keys[4], (latent, hidden), jnp.float32) * s,
        "wdp": jax.random.normal(keys[5], (pose_dims, hidden), jnp.float32) * s,
        "bd1": jnp.zeros((1, hidden), jnp.float32),
        "wd2": jax.random.normal(keys[6], (hidden, d_in), jnp.float32) * s,
        "bd2": jnp.zeros((1, d_in), jnp.float32),
    }


def _round_up(a, b):
    return ((a + b - 1) // b) * b


@jax.jit
def affinity_vae_forward(x, eps, params):
    """Forward pass: returns (x_recon, mu, log_var, z, pose) like the torch module."""
    f32 = jnp.float32
    bf16 = jnp.bfloat16

    B, C, H, W = x.shape
    D = C * H * W
    hidden = params["we1"].shape[1]
    L = params["wmu"].shape[1]
    P = params["wpo"].shape[1]
    SLAB = _round_up(3 * L + P, 128)          # lane-dense packed head slab width

    # ---- batch tiling (grid over batch, rows padded to a multiple of TB) ----
    TB = 256 if B >= 256 else _round_up(B, 8)
    B_pad = _round_up(B, TB)
    n_tiles = B_pad // TB

    x_flat = x.reshape(B, D).astype(bf16)
    x_pad = jnp.pad(x_flat, ((0, B_pad - B), (0, 0)))

    # eps placed lane-dense at the z columns [2L, 3L) of the packed slab.
    eps_slab = jnp.zeros((B_pad, SLAB), f32).at[:B, 2 * L:3 * L].set(eps.astype(f32))

    # ---- fused / padded weights (bf16 for the MXU, f32 biases) --------------
    we1 = params["we1"].astype(bf16)
    be1 = params["be1"].astype(f32).reshape(1, hidden)

    w_heads = jnp.zeros((hidden, SLAB), f32)
    w_heads = w_heads.at[:, 0:L].set(params["wmu"])
    w_heads = w_heads.at[:, L:2 * L].set(params["wlv"])
    w_heads = w_heads.at[:, 2 * L:3 * L].set(params["wmu"])      # mu dup -> z slot
    w_heads = w_heads.at[:, 3 * L:3 * L + P].set(params["wpo"])
    w_heads = w_heads.astype(bf16)

    b_heads = jnp.zeros((1, SLAB), f32)
    b_heads = b_heads.at[:, 0:L].set(params["bmu"])
    b_heads = b_heads.at[:, L:2 * L].set(params["blv"])
    b_heads = b_heads.at[:, 2 * L:3 * L].set(params["bmu"])
    b_heads = b_heads.at[:, 3 * L:3 * L + P].set(params["bpo"])

    # one-hot f32 selector: copies log_var columns onto the z columns (exact)
    s_lv = jnp.zeros((SLAB, SLAB), f32)
    s_lv = s_lv.at[jnp.arange(L) + L, jnp.arange(L) + 2 * L].set(1.0)

    wd1 = jnp.zeros((SLAB, hidden), f32)
    wd1 = wd1.at[2 * L:3 * L, :].set(params["wdz"])
    wd1 = wd1.at[3 * L:3 * L + P, :].set(params["wdp"])
    wd1 = wd1.astype(bf16)
    bd1 = params["bd1"].astype(f32).reshape(1, hidden)

    wd2 = params["wd2"].astype(bf16)
    bd2 = params["bd2"].astype(f32).reshape(1, D)

    # ---- BlockSpecs: batch-tiled activations, VMEM-resident weights ---------
    def btile(shape):
        return pl.BlockSpec(shape, lambda i: (i, 0))

    def resident(shape):
        return pl.BlockSpec(shape, lambda i: (0, 0))

    in_specs = [
        btile((TB, D)),             # x tile
        btile((TB, SLAB)),          # eps slab tile
        resident((D, hidden)),      # we1
        resident((1, hidden)),      # be1
        resident((hidden, SLAB)),   # fused head weight
        resident((1, SLAB)),        # fused head bias
        resident((SLAB, SLAB)),     # log_var -> z selector
        resident((SLAB, hidden)),   # fused decoder-in weight
        resident((1, hidden)),      # bd1
        resident((hidden, D)),      # wd2
        resident((1, D)),           # bd2
    ]
    out_specs = (btile((TB, D)), btile((TB, SLAB)))
    out_shapes = (
        jax.ShapeDtypeStruct((B_pad, D), f32),      # x_recon (flat)
        jax.ShapeDtypeStruct((B_pad, SLAB), f32),   # packed [mu|lv|z|pose]
    )

    # VMEM budget: resident weights + 2x double-buffered batch tiles; cap at
    # 64 MiB so the same tiling stays legal on v7x.
    # TODO(synk): if D*hidden weights ever exceed this budget, add a reduction
    # grid axis over D for the first/last matmuls instead of keeping them resident.
    weight_bytes = (
        (D * hidden + hidden * SLAB + SLAB * hidden + hidden * D) * 2
        + (2 * hidden + SLAB + D) * 4 + SLAB * SLAB * 4
    )
    tile_bytes = TB * D * 2 + TB * SLAB * 4 + TB * D * 4 + TB * SLAB * 4
    vmem_limit = int(min(64 * 1024 * 1024,
                         max(16 * 1024 * 1024, 2 * (weight_bytes + 2 * tile_bytes))))

    xrec_pad, slab = pl.pallas_call(
        _affinity_vae_kernel,
        grid=(n_tiles,),
        in_specs=in_specs,
        out_specs=out_specs,
        out_shape=out_shapes,
        compiler_params=pltpu.CompilerParams(
            dimension_semantics=("parallel",),     # split batch tiles across TCs (v7x)
            vmem_limit_bytes=vmem_limit,
        ),
    )(x_pad, eps_slab, we1, be1, w_heads, b_heads, s_lv, wd1, bd1, wd2, bd2)

    x_recon = xrec_pad[:B].reshape(B, C, H, W)
    mu = slab[:B, 0:L]
    log_var = slab[:B, L:2 * L]
    z = slab[:B, 2 * L:3 * L]
    pose = slab[:B, 3 * L:3 * L + P]
    return x_recon, mu, log_var, z, pose


def _reference_forward(x_flat, eps, p):
    """Pure-JAX reference with the same bf16-weight / f32-accumulate dataflow."""
    f32 = jnp.float32
    bf16 = jnp.bfloat16
    xb = x_flat.astype(bf16)
    h = jnp.dot(xb, p["we1"].astype(bf16), preferred_element_type=f32) + p["be1"]
    h = jnp.maximum(h, 0.0).astype(bf16)
    mu = jnp.dot(h, p["wmu"].astype(bf16), preferred_element_type=f32) + p["bmu"]
    lv = jnp.dot(h, p["wlv"].astype(bf16), preferred_element_type=f32) + p["blv"]
    pose = jnp.dot(h, p["wpo"].astype(bf16), preferred_element_type=f32) + p["bpo"]
    z = mu + eps * jnp.exp(0.5 * lv)
    hd = (jnp.dot(z.astype(bf16), p["wdz"].astype(bf16), preferred_element_type=f32)
          + jnp.dot(pose.astype(bf16), p["wdp"].astype(bf16), preferred_element_type=f32)
          + p["bd1"])
    hd = jnp.maximum(hd, 0.0).astype(bf16)
    xr = jnp.dot(hd, p["wd2"].astype(bf16), preferred_element_type=f32) + p["bd2"]
    return xr, mu, lv, z, pose


if __name__ == "__main__":
    # Small, module-consistent shapes.
    B, C, H, W = 2, 4, 16, 16
    HIDDEN, LATENT, POSE = 32, 8, 2
    D = C * H * W

    key = jax.random.PRNGKey(0)
    kx, keps = jax.random.split(key)
    x = jax.random.normal(kx, (B, C, H, W), jnp.float32)
    eps = jax.random.normal(keps, (B, LATENT), jnp.float32)   # reparam noise

    params = init_params(D, HIDDEN, LATENT, POSE, seed=1)

    outs = affinity_vae_forward(x, eps, params)
    outs = jax.block_until_ready(outs)
    x_recon, mu, log_var, z, pose = outs

    assert x_recon.shape == (B, C, H, W)
    assert mu.shape == (B, LATENT) and log_var.shape == (B, LATENT)
    assert z.shape == (B, LATENT) and pose.shape == (B, POSE)

    # Reparameterize hot-path consistency (f32-exact inside the kernel).
    z_chk = mu + eps * jnp.exp(0.5 * log_var)
    assert jnp.allclose(z, z_chk, atol=1e-4), "reparameterize mismatch"

    # Full forward vs pure-JAX reference with the same bf16/f32 recipe.
    xr_ref, mu_ref, lv_ref, z_ref, pose_ref = _reference_forward(x.reshape(B, D), eps, params)
    assert jnp.allclose(mu, mu_ref, atol=1e-3, rtol=1e-3)
    assert jnp.allclose(log_var, lv_ref, atol=1e-3, rtol=1e-3)
    assert jnp.allclose(pose, pose_ref, atol=1e-3, rtol=1e-3)
    assert jnp.allclose(z, z_ref, atol=1e-3, rtol=1e-3)
    assert jnp.allclose(x_recon.reshape(B, D), xr_ref, atol=2e-3, rtol=2e-3)

    print("KERNEL_OK")
</pallas_src>

<mosaic_0001>
module attributes {stable_mosaic.version = 11 : i64} {
  func.func @_affinity_vae_kernel(%arg0: i32, %arg1: memref<8x1024xbf16, #tpu.memory_space<vmem>>, %arg2: memref<8x128xf32, #tpu.memory_space<vmem>>, %arg3: memref<1024x32xbf16, #tpu.memory_space<vmem>>, %arg4: memref<1x32xf32, #tpu.memory_space<vmem>>, %arg5: memref<32x128xbf16, #tpu.memory_space<vmem>>, %arg6: memref<1x128xf32, #tpu.memory_space<vmem>>, %arg7: memref<128x128xf32, #tpu.memory_space<vmem>>, %arg8: memref<128x32xbf16, #tpu.memory_space<vmem>>, %arg9: memref<1x32xf32, #tpu.memory_space<vmem>>, %arg10: memref<32x1024xbf16, #tpu.memory_space<vmem>>, %arg11: memref<1x1024xf32, #tpu.memory_space<vmem>>, %arg12: memref<8x1024xf32, #tpu.memory_space<vmem>>, %arg13: memref<8x128xf32, #tpu.memory_space<vmem>>) attributes {dimension_semantics = [#tpu.dimension_semantics<parallel>], iteration_bounds = array<i64: 1>, scalar_prefetch = 0 : i64, scratch_operands = 0 : i64, tpu.core_type = #tpu.core_type<tc>, window_params = [{transform_indices = @transform_0, window_bounds = array<i64: 8, 1024>}, {transform_indices = @transform_1, window_bounds = array<i64: 8, 128>}, {pipeline_mode = #tpu.pipeline_mode<synchronous>, transform_indices = @transform_2, window_bounds = array<i64: 1024, 32>}, {pipeline_mode = #tpu.pipeline_mode<synchronous>, transform_indices = @transform_3, window_bounds = array<i64: 1, 32>}, {pipeline_mode = #tpu.pipeline_mode<synchronous>, transform_indices = @transform_4, window_bounds = array<i64: 32, 128>}, {pipeline_mode = #tpu.pipeline_mode<synchronous>, transform_indices = @transform_5, window_bounds = array<i64: 1, 128>}, {pipeline_mode = #tpu.pipeline_mode<synchronous>, transform_indices = @transform_6, window_bounds = array<i64: 128, 128>}, {pipeline_mode = #tpu.pipeline_mode<synchronous>, transform_indices = @transform_7, window_bounds = array<i64: 128, 32>}, {pipeline_mode = #tpu.pipeline_mode<synchronous>, transform_indices = @transform_8, window_bounds = array<i64: 1, 32>}, {pipeline_mode = #tpu.pipeline_mode<synchronous>, transform_indices = @transform_9, window_bounds = array<i64: 32, 1024>}, {pipeline_mode = #tpu.pipeline_mode<synchronous>, transform_indices = @transform_10, window_bounds = array<i64: 1, 1024>}, {transform_indices = @transform_11, window_bounds = array<i64: 8, 1024>}, {transform_indices = @transform_12, window_bounds = array<i64: 8, 128>}]} {
    %c0 = arith.constant 0 : index
    %c0_0 = arith.constant 0 : index
    %0 = vector.load %arg1[%c0, %c0_0] : memref<8x1024xbf16, #tpu.memory_space<vmem>>, vector<8x1024xbf16>
    %c0_1 = arith.constant 0 : index
    %c0_2 = arith.constant 0 : index
    %1 = vector.load %arg3[%c0_1, %c0_2] : memref<1024x32xbf16, #tpu.memory_space<vmem>>, vector<1024x32xbf16>
    %cst = arith.constant dense<0.000000e+00> : vector<8x32xf32>
    %2 = tpu.matmul %0, %1, %cst {dimension_numbers = #tpu.dot_dimension_numbers<[1], [0], [0], [1], [0, 0, 1, 1], [], []>} : vector<8x1024xbf16>, vector<1024x32xbf16>, vector<8x32xf32> -> vector<8x32xf32>
    %c0_3 = arith.constant 0 : index
    %c0_4 = arith.constant 0 : index
    %3 = vector.load %arg4[%c0_3, %c0_4] : memref<1x32xf32, #tpu.memory_space<vmem>>, vector<1x32xf32>
    %4 = vector.broadcast %3 : vector<1x32xf32> to vector<8x32xf32>
    %5 = arith.addf %2, %4 : vector<8x32xf32>
    %cst_5 = arith.constant 0.000000e+00 : f32
    %6 = vector.broadcast %cst_5 : f32 to vector<8x32xf32>
    %7 = arith.maximumf %5, %6 : vector<8x32xf32>
    %8 = arith.truncf %7 : vector<8x32xf32> to vector<8x32xbf16>
    %c0_6 = arith.constant 0 : index
    %c0_7 = arith.constant 0 : index
    %9 = vector.load %arg5[%c0_6, %c0_7] : memref<32x128xbf16, #tpu.memory_space<vmem>>, vector<32x128xbf16>
    %cst_8 = arith.constant dense<0.000000e+00> : vector<8x128xf32>
    %10 = tpu.matmul %8, %9, %cst_8 {dimension_numbers = #tpu.dot_dimension_numbers<[1], [0], [0], [1], [0, 0, 1, 1], [], []>} : vector<8x32xbf16>, vector<32x128xbf16>, vector<8x128xf32> -> vector<8x128xf32>
    %c0_9 = arith.constant 0 : index
    %c0_10 = arith.constant 0 : index
    %11 = vector.load %arg6[%c0_9, %c0_10] : memref<1x128xf32, #tpu.memory_space<vmem>>, vector<1x128xf32>
    %12 = vector.broadcast %11 : vector<1x128xf32> to vector<8x128xf32>
    %13 = arith.addf %10, %12 : vector<8x128xf32>
    %c0_11 = arith.constant 0 : index
    %c0_12 = arith.constant 0 : index
    %14 = vector.load %arg7[%c0_11, %c0_12] : memref<128x128xf32, #tpu.memory_space<vmem>>, vector<128x128xf32>
    %cst_13 = arith.constant dense<0.000000e+00> : vector<8x128xf32>
    %15 = tpu.matmul %13, %14, %cst_13 {dimension_numbers = #tpu.dot_dimension_numbers<[1], [0], [0], [1], [0, 0, 1, 1], [], []>} : vector<8x128xf32>, vector<128x128xf32>, vector<8x128xf32> -> vector<8x128xf32>
    %c0_14 = arith.constant 0 : index
    %c0_15 = arith.constant 0 : index
    %16 = vector.load %arg2[%c0_14, %c0_15] : memref<8x128xf32, #tpu.memory_space<vmem>>, vector<8x128xf32>
    %cst_16 = arith.constant 5.000000e-01 : f32
    %17 = vector.broadcast %cst_16 : f32 to vector<8x128xf32>
    %18 = arith.mulf %17, %15 : vector<8x128xf32>
    %19 = math.exp %18 : vector<8x128xf32>
    %20 = arith.mulf %16, %19 : vector<8x128xf32>
    %21 = arith.addf %13, %20 : vector<8x128xf32>
    %c0_17 = arith.constant 0 : index
    %c0_18 = arith.constant 0 : index
    %22 = vector.load %arg13[%c0_17, %c0_18] : memref<8x128xf32, #tpu.memory_space<vmem>>, vector<8x128xf32>
    tpu.vector_store %arg13[%c0_17, %c0_18], %21 {strides = array<i32>} : memref<8x128xf32, #tpu.memory_space<vmem>>, vector<8x128xf32>,
    %23 = arith.truncf %21 : vector<8x128xf32> to vector<8x128xbf16>
    %c0_19 = arith.constant 0 : index
    %c0_20 = arith.constant 0 : index
    %24 = vector.load %arg8[%c0_19, %c0_20] : memref<128x32xbf16, #tpu.memory_space<vmem>>, vector<128x32xbf16>
    %cst_21 = arith.constant dense<0.000000e+00> : vector<8x32xf32>
    %25 = tpu.matmul %23, %24, %cst_21 {dimension_numbers = #tpu.dot_dimension_numbers<[1], [0], [0], [1], [0, 0, 1, 1], [], []>} : vector<8x128xbf16>, vector<128x32xbf16>, vector<8x32xf32> -> vector<8x32xf32>
    %c0_22 = arith.constant 0 : index
    %c0_23 = arith.constant 0 : index
    %26 = vector.load %arg9[%c0_22, %c0_23] : memref<1x32xf32, #tpu.memory_space<vmem>>, vector<1x32xf32>
    %27 = vector.broadcast %26 : vector<1x32xf32> to vector<8x32xf32>
    %28 = arith.addf %25, %27 : vector<8x32xf32>
    %cst_24 = arith.constant 0.000000e+00 : f32
    %29 = vector.broadcast %cst_24 : f32 to vector<8x32xf32>
    %30 = arith.maximumf %28, %29 : vector<8x32xf32>
    %31 = arith.truncf %30 : vector<8x32xf32> to vector<8x32xbf16>
    %c0_25 = arith.constant 0 : index
    %c0_26 = arith.constant 0 : index
    %32 = vector.load %arg10[%c0_25, %c0_26] : memref<32x1024xbf16, #tpu.memory_space<vmem>>, vector<32x1024xbf16>
    %cst_27 = arith.constant dense<0.000000e+00> : vector<8x1024xf32>
    %33 = tpu.matmul %31, %32, %cst_27 {dimension_numbers = #tpu.dot_dimension_numbers<[1], [0], [0], [1], [0, 0, 1, 1], [], []>} : vector<8x32xbf16>, vector<32x1024xbf16>, vector<8x1024xf32> -> vector<8x1024xf32>
    %c0_28 = arith.constant 0 : index
    %c0_29 = arith.constant 0 : index
    %34 = vector.load %arg11[%c0_28, %c0_29] : memref<1x1024xf32, #tpu.memory_space<vmem>>, vector<1x1024xf32>
    %35 = vector.broadcast %34 : vector<1x1024xf32> to vector<8x1024xf32>
    %36 = arith.addf %33, %35 : vector<8x1024xf32>
    %c0_30 = arith.constant 0 : index
    %c0_31 = arith.constant 0 : index
    %37 = vector.load %arg12[%c0_30, %c0_31] : memref<8x1024xf32, #tpu.memory_space<vmem>>, vector<8x1024xf32>
    tpu.vector_store %arg12[%c0_30, %c0_31], %36 {strides = array<i32>} : memref<8x1024xf32, #tpu.memory_space<vmem>>, vector<8x1024xf32>,
    return
  }
  func.func @transform_0(%arg0: i32) -> (i32, i32) {
    %c0_i32 = arith.constant 0 : i32
    %c0_i32_0 = arith.constant 0 : i32
    return %arg0, %c0_i32 : i32, i32
  }
  func.func @transform_1(%arg0: i32) -> (i32, i32) {
    %c0_i32 = arith.constant 0 : i32
    %c0_i32_0 = arith.constant 0 : i32
    return %arg0, %c0_i32 : i32, i32
  }
  func.func @transform_2(%arg0: i32) -> (i32, i32) {
    %c0_i32 = arith.constant 0 : i32
    %c0_i32_0 = arith.constant 0 : i32
    %c0_i32_1 = arith.constant 0 : i32
    return %c0_i32, %c0_i32_0 : i32, i32
  }
  func.func @transform_3(%arg0: i32) -> (i32, i32) {
    %c0_i32 = arith.constant 0 : i32
    %c0_i32_0 = arith.constant 0 : i32
    %c0_i32_1 = arith.constant 0 : i32
    return %c0_i32, %c0_i32_0 : i32, i32
  }
  func.func @transform_4(%arg0: i32) -> (i32, i32) {
    %c0_i32 = arith.constant 0 : i32
    %c0_i32_0 = arith.constant 0 : i32
    %c0_i32_1 = arith.constant 0 : i32
    return %c0_i32, %c0_i32_0 : i32, i32
  }
  func.func @transform_5(%arg0: i32) -> (i32, i32) {
    %c0_i32 = arith.constant 0 : i32
    %c0_i32_0 = arith.constant 0 : i32
    %c0_i32_1 = arith.constant 0 : i32
    return %c0_i32, %c0_i32_0 : i32, i32
  }
  func.func @transform_6(%arg0: i32) -> (i32, i32) {
    %c0_i32 = arith.constant 0 : i32
    %c0_i32_0 = arith.constant 0 : i32
    %c0_i32_1 = arith.constant 0 : i32
    return %c0_i32, %c0_i32_0 : i32, i32
  }
  func.func @transform_7(%arg0: i32) -> (i32, i32) {
    %c0_i32 = arith.constant 0 : i32
    %c0_i32_0 = arith.constant 0 : i32
    %c0_i32_1 = arith.constant 0 : i32
    return %c0_i32, %c0_i32_0 : i32, i32
  }
  func.func @transform_8(%arg0: i32) -> (i32, i32) {
    %c0_i32 = arith.constant 0 : i32
    %c0_i32_0 = arith.constant 0 : i32
    %c0_i32_1 = arith.constant 0 : i32
    return %c0_i32, %c0_i32_0 : i32, i32
  }
  func.func @transform_9(%arg0: i32) -> (i32, i32) {
    %c0_i32 = arith.constant 0 : i32
    %c0_i32_0 = arith.constant 0 : i32
    %c0_i32_1 = arith.constant 0 : i32
    return %c0_i32, %c0_i32_0 : i32, i32
  }
  func.func @transform_10(%arg0: i32) -> (i32, i32) {
    %c0_i32 = arith.constant 0 : i32
    %c0_i32_0 = arith.constant 0 : i32
    %c0_i32_1 = arith.constant 0 : i32
    return %c0_i32, %c0_i32_0 : i32, i32
  }
  func.func @transform_11(%arg0: i32) -> (i32, i32) {
    %c0_i32 = arith.constant 0 : i32
    %c0_i32_0 = arith.constant 0 : i32
    return %arg0, %c0_i32 : i32, i32
  }
  func.func @transform_12(%arg0: i32) -> (i32, i32) {
    %c0_i32 = arith.constant 0 : i32
    %c0_i32_0 = arith.constant 0 : i32
    return %arg0, %c0_i32 : i32, i32
  }
}

</mosaic_0001>

<bundles_post_ra>
// kernel: affinity_vae_forward.1
= control target key start
LH: loop header
LB: loop body
LE: loop exit
PB: predicated region body
PF: predicated region fallthrough
CT: control target
= control target key end

     0   :  { %vm715_vm0 = vcmask 261120   ;;  %s2054_s2 = inlined_call_operand.vmem [shape: bf16[1024,32], index: 2, kind: input, shape index: {}]   ;;  %s2055_s3 = inlined_call_operand.vmem [shape: f32[1,32], index: 3, kind: input, shape index: {}]   ;;  %s2056_s0 = inlined_call_operand.vmem [shape: bf16[8,1024], index: 0, kind: input, shape index: {}]   ;;  %s2057_s5 = inlined_call_operand.vmem [shape: f32[1,128], index: 5, kind: input, shape index: {}]   ;;  %s2058_s4 = inlined_call_operand.vmem [shape: bf16[32,128], index: 4, kind: input, shape index: {}]   ;;  %s2059_s6 = inlined_call_operand.vmem [shape: f32[128,128], index: 6, kind: input, shape index: {}]   ;;  %s2060_s7 = inlined_call_operand.vmem [shape: bf16[128,32], index: 7, kind: input, shape index: {}]   ;;  %s2061_s8 = inlined_call_operand.vmem [shape: f32[1,32], index: 8, kind: input, shape index: {}]   ;;  %s2062_s9 = inlined_call_operand.vmem [shape: bf16[32,1024], index: 9, kind: input, shape index: {}]   ;;  %s2063_s1 = inlined_call_operand.vmem [shape: f32[8,128], index: 1, kind: input, shape index: {}]   ;;  %s2064_s12 = inlined_call_operand.vmem [shape: f32[8,128], index: 12, kind: output, shape index: {1}]   ;;  %s2065_s10 = inlined_call_operand.vmem [shape: f32[1,1024], index: 10, kind: input, shape index: {}]   ;;  %s2066_s11 = inlined_call_operand.vmem [shape: f32[8,1024], index: 11, kind: output, shape index: {0}]  }
   0x1   :  { %v1472_v0 = vld [vmem:[%s2054_s2 + $0x38] sm:$0xff]  ;;  %v1471_v4 = vld [vmem:[%s2054_s2 + $0x30] sm:$0xff]  ;;  %v1470_v8 = vld [vmem:[%s2054_s2 + $0x28] sm:$0xff] }
   0x2   :  { %v1480_v1 = vld [vmem:[%s2054_s2 + $0x78] sm:$0xff]  ;;  %589 = vmatpush.bf16.msra.mxu0 %v1472_v0  ;;  %v1479_v5 = vld [vmem:[%s2054_s2 + $0x70] sm:$0xff]  ;;  %v1478_v9 = vld [vmem:[%s2054_s2 + $0x68] sm:$0xff] }
   0x3   :  { %v1488_v2 = vld [vmem:[%s2054_s2 + $0xb8] sm:$0xff]  ;;  %602 = vmatpush.bf16.msra.mxu1 %v1480_v1  ;;  %v1487_v6 = vld [vmem:[%s2054_s2 + $0xb0] sm:$0xff]  ;;  %v1486_v10 = vld [vmem:[%s2054_s2 + $0xa8] sm:$0xff] }
   0x4   :  { %v1496_v3 = vld [vmem:[%s2054_s2 + $0xf8] sm:$0xff]  ;;  %615 = vmatpush.bf16.msra.mxu2 %v1488_v2  ;;  %v1495_v7 = vld [vmem:[%s2054_s2 + $0xf0] sm:$0xff]  ;;  %v1494_v11 = vld [vmem:[%s2054_s2 + $0xe8] sm:$0xff] }
   0x5   :  { %628 = vmatpush.bf16.msra.mxu3 %v1496_v3  ;;  %v1469_v12 = vld [vmem:[%s2054_s2 + $0x20] sm:$0xff]  ;;  %v1468_v16 = vld [vmem:[%s2054_s2 + $0x18] sm:$0xff]  ;;  %v1467_v20 = vld [vmem:[%s2054_s2 + $0x10] sm:$0xff] }
   0x6   :  { %590 = vmatpush.bf16.msra.mxu0 %v1471_v4  ;;  %v1477_v13 = vld [vmem:[%s2054_s2 + $0x60] sm:$0xff]  ;;  %v1476_v17 = vld [vmem:[%s2054_s2 + $0x58] sm:$0xff]  ;;  %v1475_v21 = vld [vmem:[%s2054_s2 + $0x50] sm:$0xff] }
   0x7   :  { %603 = vmatpush.bf16.msra.mxu1 %v1479_v5  ;;  %v1485_v14 = vld [vmem:[%s2054_s2 + $0xa0] sm:$0xff]  ;;  %v1484_v18 = vld [vmem:[%s2054_s2 + $0x98] sm:$0xff]  ;;  %v1483_v22 = vld [vmem:[%s2054_s2 + $0x90] sm:$0xff] }
   0x8   :  { %616 = vmatpush.bf16.msra.mxu2 %v1487_v6  ;;  %v1493_v15 = vld [vmem:[%s2054_s2 + $0xe0] sm:$0xff]  ;;  %v1492_v19 = vld [vmem:[%s2054_s2 + $0xd8] sm:$0xff]  ;;  %v1491_v23 = vld [vmem:[%s2054_s2 + $0xd0] sm:$0xff] }
   0x9   :  { %629 = vmatpush.bf16.msra.mxu3 %v1495_v7  ;;  %v1466_v24 = vld [vmem:[%s2054_s2 + $0x8] sm:$0xff]  ;;  %v41_v29 = vld [vmem:[%s2056_s0] sm:$0xff]  ;;  %v1504_v38 = vld [vmem:[%s2054_s2 + $0x138] sm:$0xff] }
   0xa   :  { %591 = vmatpush.bf16.msra.mxu0 %v1470_v8  ;;  %v1474_v25 = vld [vmem:[%s2054_s2 + $0x48] sm:$0xff]  ;;  %v1465_v30 = vld [vmem:[%s2054_s2] sm:$0xff]  ;;  %v181_v33 = vunpack.c.l.b16 %v41_v29  ;;  %v182_v37 = vunpack.c.h.b16 %v41_v29  ;;  %v1512_v39 = vld [vmem:[%s2054_s2 + $0x178] sm:$0xff] }
   0xb   :  { %604 = vmatpush.bf16.msra.mxu1 %v1478_v9  ;;  %v1482_v26 = vld [vmem:[%s2054_s2 + $0x88] sm:$0xff]  ;;  %v1473_v31 = vld [vmem:[%s2054_s2 + $0x40] sm:$0xff]  ;;  %v1520_v40 = vld [vmem:[%s2054_s2 + $0x1b8] sm:$0xff] }
   0xc   :  { %617 = vmatpush.bf16.msra.mxu2 %v1486_v10  ;;  %v1490_v27 = vld [vmem:[%s2054_s2 + $0xc8] sm:$0xff]  ;;  %v1481_v34 = vld [vmem:[%s2054_s2 + $0x80] sm:$0xff]  ;;  %v1528_v41 = vld [vmem:[%s2054_s2 + $0x1f8] sm:$0xff]  ;;  %v189_v43 = vpack.c.b16 %v181_v33, %v181_v33  ;;  %v190_v45 = vpack.c.b16 %v182_v37, %v182_v37 }
   0xd   :  { %630 = vmatpush.bf16.msra.mxu3 %v1494_v11  ;;  %v42_v28 = vld [vmem:[%s2056_s0 + $0x8] sm:$0xff]  ;;  %v1489_v35 = vld [vmem:[%s2054_s2 + $0xc0] sm:$0xff]  ;;  %v1503_v46 = vld [vmem:[%s2054_s2 + $0x130] sm:$0xff] }
   0xe   :  { %592 = vmatpush.bf16.msra.mxu0 %v1469_v12  ;;  %v183_v32 = vunpack.c.l.b16 %v42_v28  ;;  %v184_v36 = vunpack.c.h.b16 %v42_v28  ;;  %v1511_v47 = vld [vmem:[%s2054_s2 + $0x170] sm:$0xff]  ;;  %v1502_v50 = vld [vmem:[%s2054_s2 + $0x128] sm:$0xff]  ;;  %v1501_v54 = vld [vmem:[%s2054_s2 + $0x120] sm:$0xff] }
   0xf   :  { %605 = vmatpush.bf16.msra.mxu1 %v1477_v13  ;;  %v1519_v48 = vld [vmem:[%s2054_s2 + $0x1b0] sm:$0xff]  ;;  %v1510_v51 = vld [vmem:[%s2054_s2 + $0x168] sm:$0xff]  ;;  %v1509_v55 = vld [vmem:[%s2054_s2 + $0x160] sm:$0xff] }
  0x10   :  { %618 = vmatpush.bf16.msra.mxu2 %v1485_v14  ;;  %v191_v42 = vpack.c.b16 %v183_v32, %v183_v32  ;;  %v192_v44 = vpack.c.b16 %v184_v36, %v184_v36  ;;  %v1527_v49 = vld [vmem:[%s2054_s2 + $0x1f0] sm:$0xff]  ;;  %v1518_v52 = vld [vmem:[%s2054_s2 + $0x1a8] sm:$0xff]  ;;  %v1517_v56 = vld [vmem:[%s2054_s2 + $0x1a0] sm:$0xff] }
  0x11   :  { %631 = vmatpush.bf16.msra.mxu3 %v1493_v15  ;;  %v1526_v53 = vld [vmem:[%s2054_s2 + $0x1e8] sm:$0xff]  ;;  %v1525_v57 = vld [vmem:[%s2054_s2 + $0x1e0] sm:$0xff]  ;;  %v1500_v58 = vld [vmem:[%s2054_s2 + $0x118] sm:$0xff] }
  0x12   :  { %593 = vmatpush.bf16.msra.mxu0 %v1468_v16  ;;  %v1508_v59 = vld [vmem:[%s2054_s2 + $0x158] sm:$0xff]  ;;  %v1499_v62 = vld [vmem:[%s2054_s2 + $0x110] sm:$0xff]  ;;  %v1498_v2 = vld [vmem:[%s2054_s2 + $0x108] sm:$0xff] }
  0x13   :  { %606 = vmatpush.bf16.msra.mxu1 %v1476_v17  ;;  %v1516_v60 = vld [vmem:[%s2054_s2 + $0x198] sm:$0xff]  ;;  %v1507_v63 = vld [vmem:[%s2054_s2 + $0x150] sm:$0xff]  ;;  %v1506_v3 = vld [vmem:[%s2054_s2 + $0x148] sm:$0xff] }
  0x14   :  { %619 = vmatpush.bf16.msra.mxu2 %v1484_v18  ;;  %v1524_v61 = vld [vmem:[%s2054_s2 + $0x1d8] sm:$0xff]  ;;  %v1515_v0 = vld [vmem:[%s2054_s2 + $0x190] sm:$0xff]  ;;  %v1514_v5 = vld [vmem:[%s2054_s2 + $0x188] sm:$0xff] }
  0x15   :  { %632 = vmatpush.bf16.msra.mxu3 %v1492_v19  ;;  %v1523_v1 = vld [vmem:[%s2054_s2 + $0x1d0] sm:$0xff]  ;;  %v1522_v6 = vld [vmem:[%s2054_s2 + $0x1c8] sm:$0xff]  ;;  %v44_v7 = vld [vmem:[%s2056_s0 + $0x18] sm:$0xff] }
  0x16   :  { %594 = vmatpush.bf16.msra.mxu0 %v1467_v20  ;;  %v43_v4 = vld [vmem:[%s2056_s0 + $0x10] sm:$0xff]  ;;  %v1497_v10 = vld [vmem:[%s2054_s2 + $0x100] sm:$0xff]  ;;  %v187_v12 = vunpack.c.l.b16 %v44_v7  ;;  %v188_v13 = vunpack.c.h.b16 %v44_v7  ;;  %v1530_v20 = vld [vmem:[%s2058_s4 + $0x8] sm:$0xff] }
  0x17   :  { %607 = vmatpush.bf16.msra.mxu1 %v1475_v21  ;;  %v185_v8 = vunpack.c.l.b16 %v43_v4  ;;  %v186_v9 = vunpack.c.h.b16 %v43_v4  ;;  %v1505_v11 = vld [vmem:[%s2054_s2 + $0x140] sm:$0xff]  ;;  %v747_v29 = vld [vmem:[%s2059_s6 + $0x78] sm:$0xff]  ;;  %v745_v33 = vld [vmem:[%s2059_s6 + $0x68] sm:$0xff] }
  0x18   :  { %620 = vmatpush.bf16.msra.mxu2 %v1483_v22  ;;  %v1513_v14 = vld [vmem:[%s2054_s2 + $0x180] sm:$0xff]  ;;  %v195_v18 = vpack.c.b16 %v187_v12, %v187_v12  ;;  %v196_v19 = vpack.c.b16 %v188_v13, %v188_v13  ;;  %v743_v36 = vld [vmem:[%s2059_s6 + $0x58] sm:$0xff] }
  0x19   :  { %633 = vmatpush.bf16.msra.mxu3 %v1491_v23  ;;  %v1521_v15 = vld [vmem:[%s2054_s2 + $0x1c0] sm:$0xff]  ;;  %v193_v16 = vpack.c.b16 %v185_v8, %v185_v8  ;;  %v194_v17 = vpack.c.b16 %v186_v9, %v186_v9  ;;  %v1534_v9 = vld [vmem:[%s2060_s7 + $0x18] sm:$0xff] }
  0x1a   :  { %595 = vmatpush.bf16.msra.mxu0 %v1466_v24  ;;  %v1555_v28 = vld [vmem:[%s2055_s3] ss:$0 sm:$0xff] }
  0x1b   :  { %608 = vmatpush.bf16.msra.mxu1 %v1474_v25  ;;  %v1535_v4 = vld [vmem:[%s2060_s7 + $0x20] sm:$0xff] }
  0x1c   :  { %621 = vmatpush.bf16.msra.mxu2 %v1482_v26  ;;  %v1529_v26 = vld [vmem:[%s2058_s4] sm:$0xff] }
  0x1d   :  { %634 = vmatpush.bf16.msra.mxu3 %v1490_v27  ;;  %v1531_v12 = vld [vmem:[%s2060_s7] sm:$0xff] }
  0x1e   :  { %596 = vmatpush.bf16.msra.mxu0 %v1465_v30  ;;  %v746_v30 = vld [vmem:[%s2059_s6 + $0x70] sm:$0xff]  ;;  %v1427_v13 = vld [vmem:[%s2062_s9 + $0x40] sm:$0xf] }
  0x1f   :  { %609 = vmatpush.bf16.msra.mxu1 %v1473_v31 }
  0x20   :  { %622 = vmatpush.bf16.msra.mxu2 %v1481_v34 }
  0x21   :  { %635 = vmatpush.bf16.msra.mxu3 %v1489_v35  ;;  %597 = vmatmul.bf16.vlgmr.msra.gmra.mxu0 %v189_v43  ;;  %v744_v35 = vld [vmem:[%s2059_s6 + $0x60] sm:$0xff] }
  0x22   :  { %641 = vmatpush.bf16.msrb.mxu0 %v1504_v38  ;;  %610 = vmatmul.bf16.vlgmr.msra.gmra.mxu1 %v190_v45  ;;  %v742_v38 = vld [vmem:[%s2059_s6 + $0x50] sm:$0xff] }
  0x23   :  { %654 = vmatpush.bf16.msrb.mxu1 %v1512_v39  ;;  %623 = vmatmul.bf16.vlgmr.msra.gmra.mxu2 %v191_v42  ;;  %v741_v39 = vld [vmem:[%s2059_s6 + $0x48] sm:$0xff]  ;;  %v739_v42 = vld [vmem:[%s2059_s6 + $0x38] sm:$0xff] }
  0x24   :  { %667 = vmatpush.bf16.msrb.mxu2 %v1520_v40  ;;  %636 = vmatmul.bf16.vlgmr.msra.gmra.mxu3 %v192_v44 }
  0x25   :  { %680 = vmatpush.bf16.msrb.mxu3 %v1528_v41  ;;  %v740_v41 = vld [vmem:[%s2059_s6 + $0x40] sm:$0xff] }
  0x26   :  { %642 = vmatpush.bf16.msrb.mxu0 %v1503_v46  ;;  %v738_v46 = vld [vmem:[%s2059_s6 + $0x30] sm:$0xff] }
  0x27   :  { %655 = vmatpush.bf16.msrb.mxu1 %v1511_v47 }
  0x28   :  { %668 = vmatpush.bf16.msrb.mxu2 %v1519_v48  ;;  %v737_v48 = vld [vmem:[%s2059_s6 + $0x28] sm:$0xff] }
  0x29   :  { %681 = vmatpush.bf16.msrb.mxu3 %v1527_v49  ;;  %v736_v49 = vld [vmem:[%s2059_s6 + $0x20] sm:$0xff] }
  0x2a   :  { %643 = vmatpush.bf16.msrb.mxu0 %v1502_v50 }
  0x2b   :  { %656 = vmatpush.bf16.msrb.mxu1 %v1510_v51  ;;  %v735_v51 = vld [vmem:[%s2059_s6 + $0x18] sm:$0xff] }
  0x2c   :  { %669 = vmatpush.bf16.msrb.mxu2 %v1518_v52 }
  0x2d   :  { %682 = vmatpush.bf16.msrb.mxu3 %v1526_v53 }
  0x2e   :  { %644 = vmatpush.bf16.msrb.mxu0 %v1501_v54 }
  0x2f   :  { %657 = vmatpush.bf16.msrb.mxu1 %v1509_v55 }
  0x30   :  { %670 = vmatpush.bf16.msrb.mxu2 %v1517_v56 }
  0x31   :  { %683 = vmatpush.bf16.msrb.mxu3 %v1525_v57  ;;  %v734_v57 = vld [vmem:[%s2059_s6 + $0x10] sm:$0xff] }
  0x32   :  { %645 = vmatpush.bf16.msrb.mxu0 %v1500_v58 }
  0x33   :  { %658 = vmatpush.bf16.msrb.mxu1 %v1508_v59 }
  0x34   :  { %671 = vmatpush.bf16.msrb.mxu2 %v1516_v60 }
  0x35   :  { %684 = vmatpush.bf16.msrb.mxu3 %v1524_v61 }
  0x36   :  { %646 = vmatpush.bf16.msrb.mxu0 %v1499_v62 }
  0x37   :  { %659 = vmatpush.bf16.msrb.mxu1 %v1507_v63  ;;  %v733_v63 = vld [vmem:[%s2059_s6 + $0x8] sm:$0xff] }
  0x38   :  { %672 = vmatpush.bf16.msrb.mxu2 %v1515_v0  ;;  %v732_v0 = vld [vmem:[%s2059_s6] sm:$0xff] }
  0x39   :  { %685 = vmatpush.bf16.msrb.mxu3 %v1523_v1  ;;  %v1538_v1 = vld [vmem:[%s2060_s7 + $0x38] sm:$0xff] }
  0x3a   :  { %647 = vmatpush.bf16.msrb.mxu0 %v1498_v2  ;;  %v1537_v2 = vld [vmem:[%s2060_s7 + $0x30] sm:$0xff] }
  0x3b   :  { %660 = vmatpush.bf16.msrb.mxu1 %v1506_v3  ;;  %v1536_v3 = vld [vmem:[%s2060_s7 + $0x28] sm:$0xff] }
  0x3c   :  { %673 = vmatpush.bf16.msrb.mxu2 %v1514_v5  ;;  %v1556_v5 = vld [vmem:[%s2057_s5] ss:$0 sm:$0xff] }
  0x3d   :  { %686 = vmatpush.bf16.msrb.mxu3 %v1522_v6 }
  0x3e   :  { %648 = vmatpush.bf16.msrb.mxu0 %v1497_v10  ;;  %v1533_v10 = vld [vmem:[%s2060_s7 + $0x10] sm:$0xff] }
  0x3f   :  { %661 = vmatpush.bf16.msrb.mxu1 %v1505_v11  ;;  %v1532_v11 = vld [vmem:[%s2060_s7 + $0x8] sm:$0xff] }
  0x40   :  { %674 = vmatpush.bf16.msrb.mxu2 %v1513_v14  ;;  %v1551_v14 = vld [vmem:[%s2062_s9 + $0x5c] sm:$0xf0] }
  0x41   :  { %687 = vmatpush.bf16.msrb.mxu3 %v1521_v15  ;;  %649 = vmatmul.bf16.vlgmr.msrb.gmra.mxu0 %v193_v16  ;;  %v1395_v15 = vld [vmem:[%s2062_s9] sm:$0xf]  ;;  %v1428_v16 = vor.u32 %v1551_v14, %v1427_v13 }
  0x42   :  { %662 = vmatmul.bf16.vlgmr.msrb.gmra.mxu1 %v194_v17  ;;  %725 = vmatpush.bf16.msra.mxu0 %v1530_v20  ;;  %v1543_v17 = vld [vmem:[%s2062_s9 + $0x1c] sm:$0xf0] }
  0x43   :  { %675 = vmatmul.bf16.vlgmr.msrb.gmra.mxu2 %v195_v18  ;;  %748 = vmatpush.msra.mxu1 %v747_v29  ;;  %v1396_v18 = vor.u32 %v1543_v17, %v1395_v15  ;;  %v1548_v29 = vld [vmem:[%s2062_s9 + $0x4c] sm:$0xf] }
  0x44   :  { %688 = vmatmul.bf16.vlgmr.msrb.gmra.mxu3 %v196_v19  ;;  %844 = vmatpush.bf16.msra.mxu2 %v1538_v1 }
  0x45   :  { %749 = vmatpush.msra.mxu1 %v746_v30  ;;  %982 = vmatpush.bf16.msra.mxu3 %v1428_v16 }
  0x46   :  { %726 = vmatpush.bf16.msra.mxu0 %v1529_v26 }
  0x47   :  { %750 = vmatpush.msra.mxu1 %v745_v33  ;;  %v1445_v33 = vld [vmem:[%s2062_s9 + $0x70] sm:$0xf0] }
  0x48   :  { %845 = vmatpush.bf16.msra.mxu2 %v1537_v2  ;;  %v1451_v2 = vld [vmem:[%s2062_s9 + $0x58] sm:$0xf] }
  0x49   :  { %751 = vmatpush.msra.mxu1 %v744_v35  ;;  %983 = vmatpush.bf16.msra.mxu3 %v1396_v18 }
  0x4b   :  { %752 = vmatpush.msra.mxu1 %v743_v36  ;;  %v1539_v36 = vld [vmem:[%s2062_s9 + $0x4] sm:$0xf] }
  0x4c   :  { %846 = vmatpush.bf16.msra.mxu2 %v1536_v3  ;;  %v1554_v3 = vld [vmem:[%s2062_s9 + $0x74] sm:$0xf0] }
  0x4d   :  { %753 = vmatpush.msra.mxu1 %v742_v38  ;;  %v1540_v38 = vld [vmem:[%s2062_s9 + $0xc] sm:$0xf] }
  0x4f   :  { %754 = vmatpush.msra.mxu1 %v741_v39 }
  0x50   :  { %847 = vmatpush.bf16.msra.mxu2 %v1535_v4 }
  0x51   :  { %755 = vmatpush.msra.mxu1 %v740_v41  ;;  %v1541_v41 = vld [vmem:[%s2062_s9 + $0x14] sm:$0xf] }
  0x53   :  { %756 = vmatpush.msra.mxu1 %v739_v42  ;;  %v1413_v42 = vld [vmem:[%s2062_s9 + $0x30] sm:$0xf0] }
  0x54   :  { %848 = vmatpush.bf16.msra.mxu2 %v1534_v9 }
  0x55   :  { %757 = vmatpush.msra.mxu1 %v738_v46  ;;  %v1552_v46 = vld [vmem:[%s2062_s9 + $0x64] sm:$0xf0] }
  0x57   :  { %758 = vmatpush.msra.mxu1 %v737_v48  ;;  %v1403_v48 = vld [vmem:[%s2062_s9 + $0x8] sm:$0xf] }
  0x58   :  { %849 = vmatpush.bf16.msra.mxu2 %v1533_v10 }
  0x59   :  { %759 = vmatpush.msra.mxu1 %v736_v49  ;;  %v1544_v49 = vld [vmem:[%s2062_s9 + $0x24] sm:$0xf0] }
  0x5b   :  { %760 = vmatpush.msra.mxu1 %v735_v51  ;;  %v1553_v51 = vld [vmem:[%s2062_s9 + $0x6c] sm:$0xf0] }
  0x5c   :  { %850 = vmatpush.bf16.msra.mxu2 %v1532_v11  ;;  %v875_v11 = vld [vmem:[%s2065_s10] sm:$0xff] }
  0x5d   :  { %761 = vmatpush.msra.mxu1 %v734_v57  ;;  %v1411_v57 = vld [vmem:[%s2062_s9 + $0x10] sm:$0xf]  ;;  %v880_v13 = vperm.slane %v875_v11, 3  ;;  %v877_v18 = vperm.slane %v875_v11, 0 }
  0x5f   :  { %762 = vmatpush.msra.mxu1 %v733_v63  ;;  %v1557_v63 = vld [vmem:[%s2061_s8] ss:$0 sm:$0xff] }
  0x60   :  { %851 = vmatpush.bf16.msra.mxu2 %v1531_v12  ;;  %v878_v12 = vperm.slane %v875_v11, 1 }
  0x61   :  { %763 = vmatpush.msra.mxu1 %v732_v0 }
  0x9e   :  { %v598_v21 = vpop.f32.mrf.mxu0 }
  0x9f   :  { %v611_v22 = vpop.f32.mrf.mxu1  ;;  %v599_v34 = vadd.f32 %v1555_v28, %v598_v21  ;;  %v1429_v28 = vld [vmem:[%s2062_s9 + $0x60] sm:$0xf0] }
  0xa1   :  { %v612_v37 = vadd.f32 %v611_v22, %v599_v34  ;;  %v768_v22 = vld [vmem:[%s2063_s1] sm:$0xff] }
  0xa6   :  { %v624_v23 = vpop.f32.mrf.mxu2  ;;  %v600_v25 = vpop.f32.mrf.mxu0 }
  0xa7   :  { %v637_v24 = vpop.f32.mrf.mxu3  ;;  %v613_v27 = vpop.f32.mrf.mxu1  ;;  %v625_v40 = vadd.f32 %v624_v23, %v612_v37  ;;  %v1397_v37 = vld [vmem:[%s2062_s9 + $0x20] sm:$0xf0] }
  0xa8   :  { %v1547_v27 = vld [vmem:[%s2062_s9 + $0x44] sm:$0xf]  ;;  %v1400_v39 = vor.u32 %v1539_v36, %v1397_v37 }
  0xa9   :  { %v638_v43 = vadd.f32 %v637_v24, %v625_v40  ;;  %v1432_v30 = vor.u32 %v1547_v27, %v1429_v28  ;;  %v1405_v40 = vld [vmem:[%s2062_s9 + $0x28] sm:$0xf0]  ;;  %v884_v28 = vperm.slane %v875_v11, 7 }
  0xab   :  { %995 = vmatpush.bf16.msrb.mxu0 %v1432_v30 }
  0xae   :  { %v626_v31 = vpop.f32.mrf.mxu2 }
  0xaf   :  { %v639_v32 = vpop.f32.mrf.mxu3  ;;  %v1437_v31 = vld [vmem:[%s2062_s9 + $0x68] sm:$0xf0]  ;;  %996 = vmatpush.bf16.msrb.mxu0 %v1400_v39 }
  0xb0   :  { %v1549_v32 = vld [vmem:[%s2062_s9 + $0x54] sm:$0xf]  ;;  %v1440_v34 = vor.u32 %v1548_v29, %v1437_v31 }
  0xb1   :  { %v1448_v35 = vor.u32 %v1549_v32, %v1445_v33 }
  0xb2   :  { %1021 = vmatpush.bf16.msrb.mxu1 %v1440_v34  ;;  %v879_v34 = vperm.slane %v875_v11, 2 }
  0xb3   :  { %1047 = vmatpush.bf16.msrb.mxu2 %v1448_v35 }
  0xbe   :  { %v650_v44 = vpop.f32.mrf.mxu0 }
  0xbf   :  { %v663_v45 = vpop.f32.mrf.mxu1  ;;  %v651_v47 = vadd.f32 %v650_v44, %v638_v43  ;;  %v1408_v43 = vor.u32 %v1540_v38, %v1405_v40  ;;  %v1416_v44 = vor.u32 %v1541_v41, %v1413_v42  ;;  %v883_v40 = vperm.slane %v875_v11, 6 }
  0xc1   :  { %v664_v50 = vadd.f32 %v663_v45, %v651_v47  ;;  %1022 = vmatpush.bf16.msrb.mxu1 %v1408_v43  ;;  %1048 = vmatpush.bf16.msrb.mxu2 %v1416_v44  ;;  %v1435_v45 = vld [vmem:[%s2062_s9 + $0x48] sm:$0xf] }
  0xc2   :  { %v1436_v47 = vor.u32 %v1552_v46, %v1435_v45 }
  0xc4   :  { %1008 = vmatpush.bf16.msrb.mxu3 %v1436_v47 }
  0xc6   :  { %v676_v52 = vpop.f32.mrf.mxu2  ;;  %v652_v55 = vpop.f32.mrf.mxu0 }
  0xc7   :  { %v689_v53 = vpop.f32.mrf.mxu3  ;;  %v677_v54 = vadd.f32 %v676_v52, %v664_v50  ;;  %v665_v56 = vpop.f32.mrf.mxu1  ;;  %v1443_v50 = vld [vmem:[%s2062_s9 + $0x50] sm:$0xf]  ;;  %v1550_v52 = vld [vmem:[%s2062_s9 + $0x5c] sm:$0xf] }
  0xc8   :  { %v1444_v55 = vor.u32 %v1553_v51, %v1443_v50 }
  0xc9   :  { %v690_v58 = vadd.f32 %v689_v53, %v677_v54  ;;  %v1453_v53 = vld [vmem:[%s2062_s9 + $0x78] sm:$0xf0]  ;;  %v1404_v54 = vor.u32 %v1544_v49, %v1403_v48 }
  0xca   :  { %v1456_v56 = vor.u32 %v1550_v52, %v1453_v53 }
  0xcb   :  { %v693_v59 = vmax.f32 %v690_v58, 0.0  ;;  %v1545_v58 = vld [vmem:[%s2062_s9 + $0x2c] sm:$0xf0]  ;;  %1009 = vmatpush.bf16.msrb.mxu3 %v1404_v54 }
  0xcd   :  { %v694_v60 = vpack.c.bf16 %v693_v59, %v693_v59  ;;  %v1542_v59 = vld [vmem:[%s2062_s9 + $0x1c] sm:$0xf] }
  0xce   :  { %v678_v61 = vpop.f32.mrf.mxu2 }
  0xcf   :  { %v691_v62 = vpop.f32.mrf.mxu3  ;;  %1360 = vmatmul.msk.bf16.vlgmr.msra.gmra.mxu0 %vm715_vm0, %v694_v60  ;;  %v1421_v60 = vld [vmem:[%s2062_s9 + $0x38] sm:$0xf0]  ;;  %v1412_v61 = vor.u32 %v1545_v58, %v1411_v57 }
  0xd0   :  { %1034 = vmatpush.bf16.msra.mxu0 %v1444_v55  ;;  %v1424_v62 = vor.u32 %v1542_v59, %v1421_v60 }
  0xd4   :  { %1035 = vmatpush.bf16.msra.mxu0 %v1412_v61 }
 0x14c   :  { %v728_v6 = vpop.f32.mrf.mxu0 }
 0x14d   :  { %v729_v7 = vadd.f32 %v1556_v5, %v728_v6  ;;  %v1452_v6 = vor.u32 %v1554_v3, %v1451_v2 }
 0x14f   :  { %764 = vmatmul.f32.vlgmr.msra.gmra.mxu1 %v729_v7 }
 0x150   :  { %1073 = vmatpush.bf16.msra.mxu1 %v1456_v56 }
 0x154   :  { %v730_v8 = vpop.f32.mrf.mxu0  ;;  %1074 = vmatpush.bf16.msra.mxu1 %v1424_v62 }
 0x155   :  { %v1546_v8 = vld [vmem:[%s2062_s9 + $0x34] sm:$0xf0] }
 0x1cc   :  { %v765_v19 = vpop.f32.mrf.mxu1 }
 0x1cd   :  { %v769_v20 = vmul.f32 0.5, %v765_v19  ;;  %v882_v19 = vperm.slane %v875_v11, 5 }
 0x1cf   :  { %v770_v21 = vmul.f32 1.442695, %v769_v20 }
 0x1d1   :  { %1558 = vpow2.f32 %v770_v21 }
 0x1d7   :  { %v1559_v23 = vpop.eup %1558 }
 0x1d8   :  { %v772_v24 = vmul.f32 %v1559_v23, %v768_v22 }
 0x1da   :  { %v773_v25 = vadd.f32 %v772_v24, %v729_v7  ;;  %v1419_v7 = vld [vmem:[%s2062_s9 + $0x18] sm:$0xf] }
 0x1db   :  { %v1420_v10 = vor.u32 %v1546_v8, %v1419_v7 }
 0x1dc   :  { %774 = vst [vmem:[%s2064_s12] sm:$0xff] %v773_v25  ;;  %v775_v26 = vpack.c.bf16 %v773_v25, %v773_v25 }
 0x1de   :  { %852 = vmatmul.bf16.vlgmr.msra.gmra.mxu2 %v775_v26  ;;  %v881_v26 = vperm.slane %v875_v11, 4 }
 0x261   :  { %v853_v0 = vpop.f32.mrf.mxu2 }
 0x262   :  { %v854_v1 = vadd.f32 %v1557_v63, %v853_v0 }
 0x264   :  { %v857_v4 = vmax.f32 %v854_v1, 0.0 }
 0x266   :  { %v858_v5 = vpack.c.bf16 %v857_v4, %v857_v4 }
 0x268   :  { %1457 = vmatmul.msk.bf16.vlgmr.msra.gmra.mxu3 %vm715_vm0, %v858_v5  ;;  %1458 = vmatmul.msk.bf16.vlgmr.msrb.gmra.mxu0 %vm715_vm0, %v858_v5 }
 0x269   :  { %1460 = vmatmul.msk.bf16.vlgmr.msrb.gmra.mxu1 %vm715_vm0, %v858_v5  ;;  %1462 = vmatmul.msk.bf16.vlgmr.msrb.gmra.mxu2 %vm715_vm0, %v858_v5  ;;  %v855_v9 = vpop.f32.mrf.mxu2 }
 0x26a   :  { %1060 = vmatpush.bf16.msra.mxu3 %v1452_v6 }
 0x26e   :  { %1061 = vmatpush.bf16.msra.mxu3 %v1420_v10 }
 0x278   :  { %1459 = vmatmul.msk.bf16.vlgmr.msrb.gmra.mxu3 %vm715_vm0, %v858_v5  ;;  %1461 = vmatmul.msk.bf16.vlgmr.msra.gmra.mxu0 %vm715_vm0, %v858_v5 }
 0x279   :  { %1464 = vmatmul.msk.bf16.vlgmr.msra.gmra.mxu1 %vm715_vm0, %v858_v5 }
 0x288   :  { %1463 = vmatmul.msk.bf16.vlgmr.msra.gmra.mxu3 %vm715_vm0, %v858_v5 }
 0x2e5   :  { %v998_v14 = vpop.f32.mrf.mxu0 }
 0x2e6   :  { %v999_v15 = vadd.f32 %v998_v14, %v878_v12  ;;  %v1024_v16 = vpop.f32.mrf.mxu1 }
 0x2e7   :  { %v1025_v17 = vadd.f32 %v1024_v16, %v880_v13 }
 0x2e8   :  { %1081 = vst [vmem:[%s2066_s11 + $0x8] sm:$0xff] %v999_v15 }
 0x2e9   :  { %1083 = vst [vmem:[%s2066_s11 + $0x18] sm:$0xff] %v1025_v17 }
 0x2eb   :  { %v985_v20 = vpop.f32.mrf.mxu3 }
 0x2ec   :  { %v986_v21 = vadd.f32 %v985_v20, %v877_v18  ;;  %v1050_v22 = vpop.f32.mrf.mxu2 }
 0x2ed   :  { %v1051_v23 = vadd.f32 %v1050_v22, %v882_v19  ;;  %v1000_v24 = vpop.f32.mrf.mxu0 }
 0x2ee   :  { %1080 = vst [vmem:[%s2066_s11] sm:$0xff] %v986_v21  ;;  %v1026_v25 = vpop.f32.mrf.mxu1 }
 0x2ef   :  { %1085 = vst [vmem:[%s2066_s11 + $0x28] sm:$0xff] %v1051_v23 }
 0x2f3   :  { %v987_v27 = vpop.f32.mrf.mxu3 }
 0x2f4   :  { %v1052_v29 = vpop.f32.mrf.mxu2 }
 0x2f5   :  { %v1037_v30 = vpop.f32.mrf.mxu0 }
 0x2f6   :  { %v1038_v31 = vadd.f32 %v1037_v30, %v881_v26  ;;  %v1076_v32 = vpop.f32.mrf.mxu1 }
 0x2f7   :  { %v1077_v33 = vadd.f32 %v1076_v32, %v884_v28 }
 0x2f8   :  { %1084 = vst [vmem:[%s2066_s11 + $0x20] sm:$0xff] %v1038_v31 }
 0x2f9   :  { %1087 = vst [vmem:[%s2066_s11 + $0x38] sm:$0xff] %v1077_v33 }
 0x2fb   :  { %v1011_v35 = vpop.f32.mrf.mxu3 }
 0x2fc   :  { %v1012_v36 = vadd.f32 %v1011_v35, %v879_v34 }
 0x2fd   :  { %v1039_v37 = vpop.f32.mrf.mxu0 }
 0x2fe   :  { %1082 = vst [vmem:[%s2066_s11 + $0x10] sm:$0xff] %v1012_v36  ;;  %v1078_v38 = vpop.f32.mrf.mxu1 }
 0x303   :  { %v1013_v39 = vpop.f32.mrf.mxu3 }
 0x30b   :  { %v1063_v41 = vpop.f32.mrf.mxu3 }
 0x30c   :  { %v1064_v42 = vadd.f32 %v1063_v41, %v883_v40 }
 0x30e   :  { %1086 = vst [vmem:[%s2066_s11 + $0x30] sm:$0xff] %v1064_v42 }
 0x313   :  { %v1065_v43 = vpop.f32.mrf.mxu3 }

</bundles_post_ra>
